<compile_context>
chip_gen: v7x
topology: tpu7x:2x2x1
jax: 0.10.0
libtpu: 0.0.40
codegen_flags: <defaults>
</compile_context>

<pallas_src>
import jax
import jax.numpy as jnp
import numpy as np
from jax.experimental import pallas as pl
from jax.experimental.pallas import tpu as pltpu


# ----------------------------- Pallas kernel ---------------------------------

def _mesn_kernel(a_ref, x_ref, nbias_ref, feat_ref,
                 w1_ref, b1_ref, w2_ref, b2_ref, w3_ref, b3_ref,
                 wg_ref, bg_ref, wf1_ref, bf1_ref, wf2_ref, bf2_ref,
                 out_ref):
    bf16 = jnp.bfloat16
    a = a_ref[...]                       # [N, N]  bf16
    x = x_ref[...]                       # [N, FP] bf16

    # ---- GCN layer 1 (F -> F, square): Â @ (X W1) + b, ReLU  (dropout = identity)
    hw = jnp.dot(x, w1_ref[...], preferred_element_type=jnp.float32)
    h = jnp.dot(a, hw.astype(bf16), preferred_element_type=jnp.float32)
    h = jnp.maximum(h + b1_ref[...], 0.0).astype(bf16)         # [N, FP] bf16

    # ---- GCN layer 2 (F -> 2F, expanding): (Â @ H) @ W2 + b, ReLU
    #      the N×N matmul runs at the narrow width F instead of 2F.
    ah = jnp.dot(a, h, preferred_element_type=jnp.float32)
    h = jnp.dot(ah.astype(bf16), w2_ref[...], preferred_element_type=jnp.float32)
    h = jnp.maximum(h + b2_ref[...], 0.0).astype(bf16)         # [N, F2P] bf16

    # ---- GCN layer 3 (2F -> F, contracting): Â @ (H W3) + b, ReLU
    hw = jnp.dot(h, w3_ref[...], preferred_element_type=jnp.float32)
    h = jnp.dot(a, hw.astype(bf16), preferred_element_type=jnp.float32)
    h = jnp.maximum(h + b3_ref[...], 0.0)                      # [N, FP] f32

    # ---- global max pool (gmp): nodes are contiguous & equal-count per graph.
    #      add per-node bias (0 real / -1e30 pad) then reshape + reduce; no [B,N,F]
    #      broadcast intermediate.  (A graph with zero valid nodes would pool to -1e30.)
    n_nodes, fp = h.shape
    n_graphs = out_ref.shape[0]
    hb = h + nbias_ref[...]                                    # [N, FP] f32
    pooled = jnp.max(hb.reshape(n_graphs, n_nodes // n_graphs, fp), axis=1)  # [B, FP]

    # ---- drug1_fc_g1 (F -> 1) + ReLU as a VPU multiply + XLU lane reduction
    x1 = jnp.sum(pooled * wg_ref[...], axis=-1, keepdims=True) + bg_ref[...]
    x1 = jnp.maximum(x1, 0.0)                                  # [B, 1]

    # ---- fc1 (feature_emb -> 128) + ReLU, then fc2 (128 -> 1) as VPU reduction
    xf = jnp.dot(feat_ref[...], wf1_ref[...], preferred_element_type=jnp.float32)
    xf = jnp.maximum(xf + bf1_ref[...], 0.0)                   # [B, 128] f32
    xf = jnp.sum(xf * wf2_ref[...], axis=-1, keepdims=True) + bf2_ref[...]

    out_ref[...] = x1 + xf


# ------------------------------- wrapper --------------------------------------

def _round_up(v, m):
    return (v + m - 1) // m * m


def _pad2(a, shape):
    return jnp.pad(a, [(0, t - s) for s, t in zip(a.shape, shape)])


def mesn_forward(a_hat, x, node_valid, feature, params, num_graphs):
    """node_valid: bool [N]; nodes must be grouped contiguously per graph with an
    equal (padded) node count per graph (N % num_graphs == 0)."""
    N, F = x.shape
    B = num_graphs
    assert N % B == 0, "pad each graph to the same node count (contiguous layout)"

    F2 = params["w2"].shape[1]
    FE = feature.shape[1]
    HID = params["wf1"].shape[1]
    FP, F2P, FEP = _round_up(F, 128), _round_up(F2, 128), _round_up(FE, 128)

    bf16, f32 = jnp.bfloat16, jnp.float32

    # lane-aligned zero padding + bf16 MXU inputs (accumulation stays f32 in-kernel)
    a_b = a_hat.astype(bf16)
    x_b = _pad2(x, (N, FP)).astype(bf16)
    feat_b = _pad2(feature, (B, FEP)).astype(bf16)
    nbias = jnp.where(node_valid, 0.0, -1e30).astype(f32)[:, None]        # [N, 1]

    w1 = _pad2(params["w1"], (FP, FP)).astype(bf16)
    b1 = _pad2(params["b1"], (1, FP)).astype(f32)
    w2 = _pad2(params["w2"], (FP, F2P)).astype(bf16)
    b2 = _pad2(params["b2"], (1, F2P)).astype(f32)
    w3 = _pad2(params["w3"], (F2P, FP)).astype(bf16)
    b3 = _pad2(params["b3"], (1, FP)).astype(f32)
    wg_row = _pad2(params["wg"].T, (1, FP)).astype(f32)                   # [1, FP]
    bg = params["bg"].astype(f32)                                         # [1, 1]
    wf1 = _pad2(params["wf1"], (FEP, HID)).astype(bf16)
    bf1 = params["bf1"].astype(f32)                                       # [1, 128]
    wf2_row = params["wf2"].T.astype(f32)                                 # [1, 128]
    bf2 = params["bf2"].astype(f32)                                       # [1, 1]

    vmem = pl.BlockSpec(memory_space=pltpu.MemorySpace.VMEM)
    return pl.pallas_call(
        _mesn_kernel,
        out_shape=jax.ShapeDtypeStruct((B, 1), f32),
        in_specs=[vmem] * 16,
        out_specs=vmem,
        compiler_params=pltpu.CompilerParams(vmem_limit_bytes=48 * 1024 * 1024),
    )(a_b, x_b, nbias, feat_b, w1, b1, w2, b2, w3, b3,
      wg_row, bg, wf1, bf1, wf2_row, bf2)


# ------------------------------- glue (plain JAX) ----------------------------

def gcn_norm_adj(edge_index, num_nodes):
    """Dense D^-1/2 (A + I) D^-1/2 (GCNConv normalization, self-loops added)."""
    A = jnp.zeros((num_nodes, num_nodes), jnp.float32)
    A = A.at[edge_index[1], edge_index[0]].set(1.0)   # message flows src -> dst
    A = A + jnp.eye(num_nodes, dtype=jnp.float32)
    deg = jnp.sum(A, axis=1)
    d_inv_sqrt = 1.0 / jnp.sqrt(jnp.maximum(deg, 1e-12))
    return A * d_inv_sqrt[:, None] * d_inv_sqrt[None, :]


def init_params(key, num_features_xd=44, feature_emb=1019):
    """Deterministic synthetic parameters (shapes from MESN.__init__)."""
    ks = jax.random.split(key, 8)
    f = num_features_xd

    def dense(k, i, o):
        return (jax.random.normal(k, (i, o), jnp.float32) * 0.1).astype(jnp.float32)

    return {
        "w1": dense(ks[0], f, f),              "b1": jnp.zeros((1, f), jnp.float32),
        "w2": dense(ks[1], f, 2 * f),          "b2": jnp.zeros((1, 2 * f), jnp.float32),
        "w3": dense(ks[2], 2 * f, f),          "b3": jnp.zeros((1, f), jnp.float32),
        "wg": dense(ks[3], f, 1),              "bg": jnp.full((1, 1), 0.01, jnp.float32),
        "wf1": dense(ks[4], feature_emb, 128), "bf1": jnp.zeros((1, 128), jnp.float32),
        "wf2": dense(ks[5], 128, 1),           "bf2": jnp.full((1, 1), 0.02, jnp.float32),
    }


def reference_forward(a_hat, x, mask, feature, p):
    """Pure-JAX f32 reference of the same forward (correctness check)."""
    def gcn(h, w, b):
        return jnp.maximum(a_hat @ (h @ w) + b, 0.0)
    h = gcn(x, p["w1"], p["b1"])
    h = gcn(h, p["w2"], p["b2"])
    h = gcn(h, p["w3"], p["b3"])
    pooled = jnp.max(jnp.where((mask > 0.5)[:, :, None], h[None], -1e30), axis=1)
    x1 = jnp.maximum(pooled @ p["wg"] + p["bg"], 0.0)
    xf = jnp.maximum(feature @ p["wf1"] + p["bf1"], 0.0) @ p["wf2"] + p["bf2"]
    return x1 + xf


# ----------------------------------- main -------------------------------------

if __name__ == "__main__":
    key = jax.random.PRNGKey(0)
    k_param, k_x, k_feat = jax.random.split(key, 3)

    # Small example: B=2 graphs, 8 nodes each (N=16), F=44 node features, feature_emb=1019.
    B, nodes_per_graph = 2, 8
    N = B * nodes_per_graph
    num_features_xd, feature_emb = 44, 1019

    # Node features.
    x = jax.random.normal(k_x, (N, num_features_xd), jnp.float32)

    # Simple undirected ring inside each graph -> edge_index [2, E].
    src, dst = [], []
    for b in range(B):
        base = b * nodes_per_graph
        for i in range(nodes_per_graph):
            u, v = base + i, base + (i + 1) % nodes_per_graph
            src += [u, v]
            dst += [v, u]
    edge_index = jnp.array([src, dst], dtype=jnp.int32)

    # batch vector (for the reference) and node-validity for the kernel's pooling.
    batch = jnp.repeat(jnp.arange(B, dtype=jnp.int32), nodes_per_graph)
    mask = (batch[None, :] == jnp.arange(B, dtype=jnp.int32)[:, None]).astype(jnp.float32)
    node_valid = jnp.ones((N,), dtype=bool)

    # Side feature [B, feature_emb].
    feature = jax.random.normal(k_feat, (B, feature_emb), jnp.float32)

    a_hat = gcn_norm_adj(edge_index, N)
    params = init_params(k_param, num_features_xd, feature_emb)

    out = mesn_forward(a_hat, x, node_valid, feature, params, B)
    out = jax.block_until_ready(out)

    ref = jax.block_until_ready(reference_forward(a_hat, x, mask, feature, params))
    # bf16 MXU inputs with f32 accumulation vs pure-f32 reference -> looser tolerance.
    np.testing.assert_allclose(np.asarray(out), np.asarray(ref), rtol=5e-2, atol=8e-2)

    print("KERNEL_OK")
</pallas_src>

<mosaic_0001>
module attributes {stable_mosaic.version = 11 : i64} {
  func.func @_mesn_kernel(%arg0: memref<16x16xbf16, #tpu.memory_space<vmem>>, %arg1: memref<16x128xbf16, #tpu.memory_space<vmem>>, %arg2: memref<16x1xf32, #tpu.memory_space<vmem>>, %arg3: memref<2x1024xbf16, #tpu.memory_space<vmem>>, %arg4: memref<128x128xbf16, #tpu.memory_space<vmem>>, %arg5: memref<1x128xf32, #tpu.memory_space<vmem>>, %arg6: memref<128x128xbf16, #tpu.memory_space<vmem>>, %arg7: memref<1x128xf32, #tpu.memory_space<vmem>>, %arg8: memref<128x128xbf16, #tpu.memory_space<vmem>>, %arg9: memref<1x128xf32, #tpu.memory_space<vmem>>, %arg10: memref<1x128xf32, #tpu.memory_space<vmem>>, %arg11: memref<1x1xf32, #tpu.memory_space<vmem>>, %arg12: memref<1024x128xbf16, #tpu.memory_space<vmem>>, %arg13: memref<1x128xf32, #tpu.memory_space<vmem>>, %arg14: memref<1x128xf32, #tpu.memory_space<vmem>>, %arg15: memref<1x1xf32, #tpu.memory_space<vmem>>, %arg16: memref<2x1xf32, #tpu.memory_space<vmem>>) attributes {dimension_semantics = [], scalar_prefetch = 0 : i64, scratch_operands = 0 : i64, tpu.core_type = #tpu.core_type<tc>} {
    %c0 = arith.constant 0 : index
    %c0_0 = arith.constant 0 : index
    %0 = vector.load %arg0[%c0, %c0_0] : memref<16x16xbf16, #tpu.memory_space<vmem>>, vector<16x16xbf16>
    %c0_1 = arith.constant 0 : index
    %c0_2 = arith.constant 0 : index
    %1 = vector.load %arg1[%c0_1, %c0_2] : memref<16x128xbf16, #tpu.memory_space<vmem>>, vector<16x128xbf16>
    %c0_3 = arith.constant 0 : index
    %c0_4 = arith.constant 0 : index
    %2 = vector.load %arg4[%c0_3, %c0_4] : memref<128x128xbf16, #tpu.memory_space<vmem>>, vector<128x128xbf16>
    %cst = arith.constant dense<0.000000e+00> : vector<16x128xf32>
    %3 = tpu.matmul %1, %2, %cst {dimension_numbers = #tpu.dot_dimension_numbers<[1], [0], [0], [1], [0, 0, 1, 1], [], []>} : vector<16x128xbf16>, vector<128x128xbf16>, vector<16x128xf32> -> vector<16x128xf32>
    %4 = arith.truncf %3 : vector<16x128xf32> to vector<16x128xbf16>
    %cst_5 = arith.constant dense<0.000000e+00> : vector<16x128xf32>
    %5 = tpu.matmul %0, %4, %cst_5 {dimension_numbers = #tpu.dot_dimension_numbers<[1], [0], [0], [1], [0, 0, 1, 1], [], []>} : vector<16x16xbf16>, vector<16x128xbf16>, vector<16x128xf32> -> vector<16x128xf32>
    %c0_6 = arith.constant 0 : index
    %c0_7 = arith.constant 0 : index
    %6 = vector.load %arg5[%c0_6, %c0_7] : memref<1x128xf32, #tpu.memory_space<vmem>>, vector<1x128xf32>
    %7 = vector.broadcast %6 : vector<1x128xf32> to vector<16x128xf32>
    %8 = arith.addf %5, %7 : vector<16x128xf32>
    %cst_8 = arith.constant 0.000000e+00 : f32
    %9 = vector.broadcast %cst_8 : f32 to vector<16x128xf32>
    %10 = arith.maximumf %8, %9 : vector<16x128xf32>
    %11 = arith.truncf %10 : vector<16x128xf32> to vector<16x128xbf16>
    %cst_9 = arith.constant dense<0.000000e+00> : vector<16x128xf32>
    %12 = tpu.matmul %0, %11, %cst_9 {dimension_numbers = #tpu.dot_dimension_numbers<[1], [0], [0], [1], [0, 0, 1, 1], [], []>} : vector<16x16xbf16>, vector<16x128xbf16>, vector<16x128xf32> -> vector<16x128xf32>
    %13 = arith.truncf %12 : vector<16x128xf32> to vector<16x128xbf16>
    %c0_10 = arith.constant 0 : index
    %c0_11 = arith.constant 0 : index
    %14 = vector.load %arg6[%c0_10, %c0_11] : memref<128x128xbf16, #tpu.memory_space<vmem>>, vector<128x128xbf16>
    %cst_12 = arith.constant dense<0.000000e+00> : vector<16x128xf32>
    %15 = tpu.matmul %13, %14, %cst_12 {dimension_numbers = #tpu.dot_dimension_numbers<[1], [0], [0], [1], [0, 0, 1, 1], [], []>} : vector<16x128xbf16>, vector<128x128xbf16>, vector<16x128xf32> -> vector<16x128xf32>
    %c0_13 = arith.constant 0 : index
    %c0_14 = arith.constant 0 : index
    %16 = vector.load %arg7[%c0_13, %c0_14] : memref<1x128xf32, #tpu.memory_space<vmem>>, vector<1x128xf32>
    %17 = vector.broadcast %16 : vector<1x128xf32> to vector<16x128xf32>
    %18 = arith.addf %15, %17 : vector<16x128xf32>
    %cst_15 = arith.constant 0.000000e+00 : f32
    %19 = vector.broadcast %cst_15 : f32 to vector<16x128xf32>
    %20 = arith.maximumf %18, %19 : vector<16x128xf32>
    %21 = arith.truncf %20 : vector<16x128xf32> to vector<16x128xbf16>
    %c0_16 = arith.constant 0 : index
    %c0_17 = arith.constant 0 : index
    %22 = vector.load %arg8[%c0_16, %c0_17] : memref<128x128xbf16, #tpu.memory_space<vmem>>, vector<128x128xbf16>
    %cst_18 = arith.constant dense<0.000000e+00> : vector<16x128xf32>
    %23 = tpu.matmul %21, %22, %cst_18 {dimension_numbers = #tpu.dot_dimension_numbers<[1], [0], [0], [1], [0, 0, 1, 1], [], []>} : vector<16x128xbf16>, vector<128x128xbf16>, vector<16x128xf32> -> vector<16x128xf32>
    %24 = arith.truncf %23 : vector<16x128xf32> to vector<16x128xbf16>
    %cst_19 = arith.constant dense<0.000000e+00> : vector<16x128xf32>
    %25 = tpu.matmul %0, %24, %cst_19 {dimension_numbers = #tpu.dot_dimension_numbers<[1], [0], [0], [1], [0, 0, 1, 1], [], []>} : vector<16x16xbf16>, vector<16x128xbf16>, vector<16x128xf32> -> vector<16x128xf32>
    %c0_20 = arith.constant 0 : index
    %c0_21 = arith.constant 0 : index
    %26 = vector.load %arg9[%c0_20, %c0_21] : memref<1x128xf32, #tpu.memory_space<vmem>>, vector<1x128xf32>
    %27 = vector.broadcast %26 : vector<1x128xf32> to vector<16x128xf32>
    %28 = arith.addf %25, %27 : vector<16x128xf32>
    %cst_22 = arith.constant 0.000000e+00 : f32
    %29 = vector.broadcast %cst_22 : f32 to vector<16x128xf32>
    %30 = arith.maximumf %28, %29 : vector<16x128xf32>
    %c0_23 = arith.constant 0 : index
    %c0_24 = arith.constant 0 : index
    %31 = vector.load %arg2[%c0_23, %c0_24] : memref<16x1xf32, #tpu.memory_space<vmem>>, vector<16x1xf32>
    %32 = vector.broadcast %31 : vector<16x1xf32> to vector<16x128xf32>
    %33 = arith.addf %30, %32 : vector<16x128xf32>
    %34 = vector.shape_cast %33 : vector<16x128xf32> to vector<2x8x128xf32>
    %cst_25 = arith.constant dense<0xFF800000> : vector<2x128xf32>
    %35 = vector.multi_reduction <maximumf>, %34, %cst_25 [1] : vector<2x8x128xf32> to vector<2x128xf32>
    %c0_26 = arith.constant 0 : index
    %c0_27 = arith.constant 0 : index
    %36 = vector.load %arg10[%c0_26, %c0_27] : memref<1x128xf32, #tpu.memory_space<vmem>>, vector<1x128xf32>
    %37 = vector.broadcast %36 : vector<1x128xf32> to vector<2x128xf32>
    %38 = arith.mulf %35, %37 : vector<2x128xf32>
    %cst_28 = arith.constant dense<0.000000e+00> : vector<2xf32>
    %39 = vector.multi_reduction <add>, %38, %cst_28 [1] : vector<2x128xf32> to vector<2xf32>
    %40 = vector.shape_cast %39 : vector<2xf32> to vector<2x1xf32>
    %c0_29 = arith.constant 0 : index
    %c0_30 = arith.constant 0 : index
    %41 = vector.load %arg11[%c0_29, %c0_30] : memref<1x1xf32, #tpu.memory_space<vmem>>, vector<1x1xf32>
    %42 = vector.broadcast %41 : vector<1x1xf32> to vector<2x1xf32>
    %43 = arith.addf %40, %42 : vector<2x1xf32>
    %cst_31 = arith.constant 0.000000e+00 : f32
    %44 = vector.broadcast %cst_31 : f32 to vector<2x1xf32>
    %45 = arith.maximumf %43, %44 : vector<2x1xf32>
    %c0_32 = arith.constant 0 : index
    %c0_33 = arith.constant 0 : index
    %46 = vector.load %arg3[%c0_32, %c0_33] : memref<2x1024xbf16, #tpu.memory_space<vmem>>, vector<2x1024xbf16>
    %c0_34 = arith.constant 0 : index
    %c0_35 = arith.constant 0 : index
    %47 = vector.load %arg12[%c0_34, %c0_35] : memref<1024x128xbf16, #tpu.memory_space<vmem>>, vector<1024x128xbf16>
    %cst_36 = arith.constant dense<0.000000e+00> : vector<2x128xf32>
    %48 = tpu.matmul %46, %47, %cst_36 {dimension_numbers = #tpu.dot_dimension_numbers<[1], [0], [0], [1], [0, 0, 1, 1], [], []>} : vector<2x1024xbf16>, vector<1024x128xbf16>, vector<2x128xf32> -> vector<2x128xf32>
    %c0_37 = arith.constant 0 : index
    %c0_38 = arith.constant 0 : index
    %49 = vector.load %arg13[%c0_37, %c0_38] : memref<1x128xf32, #tpu.memory_space<vmem>>, vector<1x128xf32>
    %50 = vector.broadcast %49 : vector<1x128xf32> to vector<2x128xf32>
    %51 = arith.addf %48, %50 : vector<2x128xf32>
    %cst_39 = arith.constant 0.000000e+00 : f32
    %52 = vector.broadcast %cst_39 : f32 to vector<2x128xf32>
    %53 = arith.maximumf %51, %52 : vector<2x128xf32>
    %c0_40 = arith.constant 0 : index
    %c0_41 = arith.constant 0 : index
    %54 = vector.load %arg14[%c0_40, %c0_41] : memref<1x128xf32, #tpu.memory_space<vmem>>, vector<1x128xf32>
    %55 = vector.broadcast %54 : vector<1x128xf32> to vector<2x128xf32>
    %56 = arith.mulf %53, %55 : vector<2x128xf32>
    %cst_42 = arith.constant dense<0.000000e+00> : vector<2xf32>
    %57 = vector.multi_reduction <add>, %56, %cst_42 [1] : vector<2x128xf32> to vector<2xf32>
    %58 = vector.shape_cast %57 : vector<2xf32> to vector<2x1xf32>
    %c0_43 = arith.constant 0 : index
    %c0_44 = arith.constant 0 : index
    %59 = vector.load %arg15[%c0_43, %c0_44] : memref<1x1xf32, #tpu.memory_space<vmem>>, vector<1x1xf32>
    %60 = vector.broadcast %59 : vector<1x1xf32> to vector<2x1xf32>
    %61 = arith.addf %58, %60 : vector<2x1xf32>
    %62 = arith.addf %45, %61 : vector<2x1xf32>
    %c0_45 = arith.constant 0 : index
    %c0_46 = arith.constant 0 : index
    %63 = vector.load %arg16[%c0_45, %c0_46] : memref<2x1xf32, #tpu.memory_space<vmem>>, vector<2x1xf32>
    tpu.vector_store %arg16[%c0_45, %c0_46], %62 {strides = array<i32>} : memref<2x1xf32, #tpu.memory_space<vmem>>, vector<2x1xf32>,
    return
  }
}

</mosaic_0001>

<bundles_post_ra>
// kernel: tpu_custom_call.1
= control target key start
LH: loop header
LB: loop body
LE: loop exit
PB: predicated region body
PF: predicated region fallthrough
CT: control target
= control target key end

     0   :  { %s2195_s0 = inlined_call_operand.vmem [shape: bf16[16,16], index: 0, kind: input, shape index: {}]   ;;  %s2196_s1 = inlined_call_operand.vmem [shape: bf16[16,128], index: 1, kind: input, shape index: {}]   ;;  %s2197_s2 = inlined_call_operand.vmem [shape: f32[16,1], index: 2, kind: input, shape index: {}]   ;;  %s2198_s3 = inlined_call_operand.vmem [shape: bf16[2,1024], index: 3, kind: input, shape index: {}]   ;;  %s2199_s4 = inlined_call_operand.hbm [shape: bf16[128,128], index: 4, kind: input, shape index: {}]   ;;  %s2200_s5 = inlined_call_operand.vmem [shape: f32[1,128], index: 5, kind: input, shape index: {}]   ;;  %s2201_s6 = inlined_call_operand.hbm [shape: bf16[128,128], index: 6, kind: input, shape index: {}]   ;;  %s2202_s7 = inlined_call_operand.vmem [shape: f32[1,128], index: 7, kind: input, shape index: {}]   ;;  %s2203_s8 = inlined_call_operand.hbm [shape: bf16[128,128], index: 8, kind: input, shape index: {}]   ;;  %s2204_s9 = inlined_call_operand.vmem [shape: f32[1,128], index: 9, kind: input, shape index: {}]   ;;  %s2205_s10 = inlined_call_operand.vmem [shape: f32[1,128], index: 10, kind: input, shape index: {}]   ;;  %s2206_s11 = inlined_call_operand.<no memory space> [shape: f32[1,1], index: 11, kind: input, shape index: {}]   ;;  %s2207_s12 = inlined_call_operand.hbm [shape: bf16[1024,128], index: 12, kind: input, shape index: {}]   ;;  %s2208_s13 = inlined_call_operand.vmem [shape: f32[1,128], index: 13, kind: input, shape index: {}]   ;;  %s2209_s14 = inlined_call_operand.vmem [shape: f32[1,128], index: 14, kind: input, shape index: {}]   ;;  %s2210_s16 = inlined_call_operand.vmem [shape: f32[2,1], index: 16, kind: output, shape index: {}]   ;;  %s2211_s15 = inlined_call_operand.<no memory space> [shape: f32[1,1], index: 15, kind: input, shape index: {}]  }
   0x1   :  { %2212 = sst [smem:[#allocation14_spill]] %s2195_s0  ;;  %v21_v0 = vstv %s2206_s11  ;;  %v23_v1 = vstv %s2211_s15 }
   0x2   :  { %22 = vst [vmem:[#allocation2] sm:$0x1] %v21_v0  ;;  %24 = vst [vmem:[#allocation3] sm:$0x1] %v23_v1 }
   0x3   :  { %25 = vsyncpa [#allocation5], 0 }
   0x4   :  { %26 = vsyncpa [#allocation7], 0 }
   0x5   :  { %27 = vsyncpa [#allocation10], 0  ;;  %s1920_s25 = smov [#allocation6]   ;;  %s1921_s27 = smov [#allocation4]  }
   0x6   :  { %s55_s26 = sshll.u32 %s1920_s25, 4  ;;  %s41_s28 = sshll.u32 %s1921_s27, 4  ;;  %s56_s26 = int_to_ptr.vmem [resolvable:$true] %s55_s26  ;;  %s2021_s28 = int_to_ptr.vmem [resolvable:$true] %s41_s28 }
   0x7   :  { %s1826_s11 = scalar_lea.hbm %s2201_s6, 1024 }
   0x8   :  { %p1827_p0 = scmp.ne.s32.totalorder %s2201_s6, %s1826_s11  ;;  %p1830_p1 = scmp.lt.u32.totalorder %s1826_s11, %s2201_s6 }
   0xa   :  { %p1832_p2 = pnand %p1830_p1, %p1827_p0 }
   0xc   :  { %1835 = shalt.err (!%p1832_p2)
}
   0xd   :  { %s1836_s19 = scalar_lea.vmem %s56_s26, 1024  ;;  %p1841_p4 = scmp.lt.s32.totalorder %s56_s26, %s56_s26 }
   0xe   :  { %p1837_p3 = scmp.ne.s32.totalorder %s56_s26, %s1836_s19  ;;  %p1842_p5 = scmp.lt.s32.totalorder %s1836_s19, %s1836_s19 }
  0x10   :  { %p1843_p6 = por %p1842_p5, %p1841_p4 }
  0x12   :  { %p1844_p7 = pnand %p1843_p6, %p1837_p3 }
  0x14   :  { %1847 = shalt.err (!%p1844_p7)
}
  0x15   :  { %s1922_s20 = smov 64   ;;  %s1923_s21 = smov 4  }
  0x16   :  { %61 = dma.hbm_to_vmem [thread:$0]  %s2201_s6, 1024, %s56_s26, [#allocation7], %s1922_s20, %s1922_s20, %s1923_s21  }
  0x17   :  { %s1848_s27 = scalar_lea.hbm %s2199_s4, 1024 }
  0x18   :  { %p1849_p8 = scmp.ne.s32.totalorder %s2199_s4, %s1848_s27  ;;  %p1852_p9 = scmp.lt.u32.totalorder %s1848_s27, %s2199_s4 }
  0x1a   :  { %p1854_p10 = pnand %p1852_p9, %p1849_p8 }
  0x1c   :  { %1857 = shalt.err (!%p1854_p10)
}
  0x1d   :  { %s1858_s17 = scalar_lea.vmem %s2021_s28, 1024  ;;  %p1863_p12 = scmp.lt.s32.totalorder %s2021_s28, %s2021_s28 }
  0x1e   :  { %p1859_p11 = scmp.ne.s32.totalorder %s2021_s28, %s1858_s17  ;;  %p1864_p13 = scmp.lt.s32.totalorder %s1858_s17, %s1858_s17 }
  0x20   :  { %p1865_p0 = por %p1864_p13, %p1863_p12 }
  0x22   :  { %p1866_p1 = pnand %p1865_p0, %p1859_p11 }
  0x24   :  { %1869 = shalt.err (!%p1866_p1)
}
  0x25   :  { %47 = dma.hbm_to_vmem [thread:$0]  %s2199_s4, 1024, %s2021_s28, [#allocation5], %s1922_s20, %s1922_s20, %s1923_s21  }
  0x26   :  { %s1924_s15 = smov [#allocation8]   ;;  %s1925_s19 = smov [#allocation9]  }
  0x27   :  { %s69_s18 = sshll.u32 %s1924_s15, 4  ;;  %s87_s22 = sshll.u32 %s1925_s19, 4  ;;  %s70_s18 = int_to_ptr.vmem [resolvable:$true] %s69_s18  ;;  %s2058_s22 = int_to_ptr.vmem [resolvable:$true] %s87_s22 }
  0x28   :  { %s1870_s25 = scalar_lea.hbm %s2203_s8, 1024 }
  0x29   :  { %p1871_p2 = scmp.ne.s32.totalorder %s2203_s8, %s1870_s25  ;;  %p1874_p3 = scmp.lt.u32.totalorder %s1870_s25, %s2203_s8 }
  0x2b   :  { %p1876_p4 = pnand %p1874_p3, %p1871_p2 }
  0x2d   :  { %1879 = shalt.err (!%p1876_p4)
}
  0x2e   :  { %s1880_s4 = scalar_lea.vmem %s70_s18, 1024  ;;  %p1885_p6 = scmp.lt.s32.totalorder %s70_s18, %s70_s18 }
  0x2f   :  { %p1881_p5 = scmp.ne.s32.totalorder %s70_s18, %s1880_s4  ;;  %p1886_p7 = scmp.lt.s32.totalorder %s1880_s4, %s1880_s4 }
  0x31   :  { %p1887_p8 = por %p1886_p7, %p1885_p6 }
  0x33   :  { %p1888_p9 = pnand %p1887_p8, %p1881_p5 }
  0x35   :  { %1891 = shalt.err (!%p1888_p9)
}
  0x36   :  { %75 = dma.hbm_to_vmem [thread:$0]  %s2203_s8, 1024, %s70_s18, [#allocation7], %s1922_s20, %s1922_s20, %s1923_s21  }
  0x37   :  { %s1892_s26 = scalar_lea.hbm %s2207_s12, 8192 }
  0x38   :  { %p1893_p10 = scmp.ne.s32.totalorder %s2207_s12, %s1892_s26  ;;  %p1896_p11 = scmp.lt.u32.totalorder %s1892_s26, %s2207_s12 }
  0x3a   :  { %p1898_p12 = pnand %p1896_p11, %p1893_p10 }
  0x3c   :  { %1901 = shalt.err (!%p1898_p12)
}
  0x3d   :  { %s1902_s25 = scalar_lea.vmem %s2058_s22, 8192  ;;  %p1907_p0 = scmp.lt.s32.totalorder %s2058_s22, %s2058_s22 }
  0x3e   :  { %p1903_p13 = scmp.ne.s32.totalorder %s2058_s22, %s1902_s25  ;;  %p1908_p1 = scmp.lt.s32.totalorder %s1902_s25, %s1902_s25 }
  0x40   :  { %p1909_p2 = por %p1908_p1, %p1907_p0 }
  0x42   :  { %p1910_p3 = pnand %p1909_p2, %p1903_p13 }
  0x44   :  { %1913 = shalt.err (!%p1910_p3)
}
  0x45   :  { %93 = dma.hbm_to_vmem [thread:$0]  %s2207_s12, 8192, %s2058_s22, [#allocation10], %s1922_s20, %s1922_s20, %s1923_s21  }
  0x46   :  { %1914 = dma.done.wait [#allocation5], 1024  }
  0x47   :  { %1915 = vsyncadd [#allocation5], 4294966272 }
  0x48   :  { %1916 = dma.done.wait [#allocation7], 2048  }
  0x49   :  { %1917 = vsyncadd [#allocation7], 4294965248 }
  0x4a   :  { %1918 = dma.done.wait [#allocation10], 8192  }
  0x4b   :  { %1919 = vsyncadd [#allocation10], 4294959104  ;;  %v1926_v2 = vmov 0.0   ;;  %vm1927_vm0 = vmmov 0   ;;  %v1735_v3 = vld [vmem:[#allocation4] sm:$0xff]   ;;  %v1736_v4 = vld [vmem:[#allocation4 + $0x8] sm:$0xff]  }
  0x4c   :  { %1646 = vmatprep.subr.bf16.mxu0 %v1926_v2  ;;  %1662 = vmatprep.mubr.msk.bf16.mxu0 %vm1927_vm0, %v1926_v2  ;;  %v1737_v5 = vld [vmem:[#allocation4 + $0x10] sm:$0xff]   ;;  %v1738_v6 = vld [vmem:[#allocation4 + $0x18] sm:$0xff]   ;;  %v1739_v7 = vld [vmem:[#allocation4 + $0x20] sm:$0xff]   ;;  %s2213_s27 = sld [smem:[#allocation14_spill]]  ;;  %vm241_vm1 = vcmask 130048   ;;  %vm640_vm2 = vcmask 1041409  }
  0x4d   :  { %1666 = vmatprep.subr.bf16.mxu1 %v1926_v2  ;;  %1668 = vmatprep.mubr.msk.bf16.mxu1 %vm1927_vm0, %v1926_v2  ;;  %v1740_v8 = vld [vmem:[#allocation4 + $0x28] sm:$0xff]   ;;  %v1741_v9 = vld [vmem:[#allocation4 + $0x30] sm:$0xff]   ;;  %v1742_v10 = vld [vmem:[#allocation4 + $0x38] sm:$0xff]   ;;  %vm643_vm3 = vcmask 1041408   ;;  %vm1415_vm4 = vcmask 1024  }
  0x4e   :  { %1647 = vmatpush3.bf16.msra.mxu0 %v1735_v3  ;;  %v1743_v11 = vld [vmem:[%s2196_s1] sm:$0xff]   ;;  %v1746_v29 = vld [vmem:[#allocation6 + $0x8] sm:$0xff]   ;;  %v1747_v30 = vld [vmem:[#allocation6 + $0x10] sm:$0xff]  }
  0x4f   :  { %1648 = vmatprep.subr.bf16.mxu0 %v1926_v2  ;;  %v1433_v18 = vld [vmem:[%s2200_s5] ss:$0 sm:$0xff]  ;;  %v1745_v28 = vld [vmem:[#allocation6] sm:$0xff]   ;;  %v1750_v33 = vld [vmem:[#allocation6 + $0x28] sm:$0xff]  }
  0x50   :  { %v1748_v31 = vld [vmem:[#allocation6 + $0x18] sm:$0xff]   ;;  %v1749_v32 = vld [vmem:[#allocation6 + $0x20] sm:$0xff]   ;;  %v1751_v34 = vld [vmem:[#allocation6 + $0x30] sm:$0xff]  }
  0x51   :  { %v1752_v35 = vld [vmem:[#allocation6 + $0x38] sm:$0xff]   ;;  %v1753_v36 = vld [vmem:[#allocation8] sm:$0xff]   ;;  %v1754_v37 = vld [vmem:[#allocation8 + $0x8] sm:$0xff]  }
  0x52   :  { %1649 = vmatpush3.bf16.msra.mxu0 %v1736_v4  ;;  %v2117_v17 = vld [vmem:[%s2213_s27] sm:$0xff]   ;;  %v1755_v38 = vld [vmem:[#allocation8 + $0x10] sm:$0xff]   ;;  %v1758_v41 = vld [vmem:[#allocation8 + $0x28] sm:$0xff]  }
  0x53   :  { %1650 = vmatprep.subr.bf16.mxu0 %v1926_v2  ;;  %v1756_v39 = vld [vmem:[#allocation8 + $0x18] sm:$0xff]   ;;  %v1757_v40 = vld [vmem:[#allocation8 + $0x20] sm:$0xff]   ;;  %v1759_v47 = vld [vmem:[#allocation8 + $0x30] sm:$0xff]  }
  0x54   :  { %v1760_v48 = vld [vmem:[#allocation8 + $0x38] sm:$0xff]   ;;  %v1763_v59 = vld [vmem:[#allocation9 + $0xc0] sm:$0xff]   ;;  %v1767_v61 = vld [vmem:[#allocation9 + $0xc8] sm:$0xff]  }
  0x55   :  { %v1437_v49 = vld [vmem:[%s2202_s7] ss:$0 sm:$0xff]  ;;  %v1764_v60 = vld [vmem:[#allocation9 + $0x80] sm:$0xff]   ;;  %v1768_v62 = vld [vmem:[#allocation9 + $0x88] sm:$0xff]  }
  0x56   :  { %1651 = vmatpush3.bf16.msra.mxu0 %v1737_v5  ;;  %v1771_v63 = vld [vmem:[#allocation9 + $0xd0] sm:$0xff]   ;;  %v1775_v1 = vld [vmem:[#allocation9 + $0xd8] sm:$0xff]   ;;  %v1779_v3 = vld [vmem:[#allocation9 + $0xe0] sm:$0xff]  }
  0x57   :  { %1652 = vmatprep.subr.bf16.mxu0 %v1926_v2  ;;  %v1772_v0 = vld [vmem:[#allocation9 + $0x90] sm:$0xff]   ;;  %v1780_v4 = vld [vmem:[#allocation9 + $0xa0] sm:$0xff]   ;;  %v1783_v5 = vld [vmem:[#allocation9 + $0xe8] sm:$0xff]  }
  0x5a   :  { %1653 = vmatpush3.bf16.msra.mxu0 %v1738_v6  ;;  %v1928_v6 = vmov 1966171168  }
  0x5b   :  { %1654 = vmatprep.subr.bf16.mxu0 %v1926_v2 }
  0x5e   :  { %1655 = vmatpush3.bf16.msra.mxu0 %v1739_v7  ;;  %v795_v7 = vunpack.c.l.s4 %v1928_v6  ;;  %v1790_v6 = vld [vmem:[#allocation9 + $0x38] sm:$0xff]  }
  0x5f   :  { %1656 = vmatprep.subr.bf16.mxu0 %v1926_v2 }
  0x62   :  { %1657 = vmatpush3.bf16.msra.mxu0 %v1740_v8  ;;  %v797_v8 = vlaneseq }
  0x63   :  { %1658 = vmatprep.subr.bf16.mxu0 %v1926_v2 }
  0x66   :  { %1659 = vmatpush3.bf16.msra.mxu0 %v1741_v9  ;;  %v1784_v9 = vld [vmem:[#allocation9 + $0xa8] sm:$0xff]  }
  0x67   :  { %1660 = vmatprep.subr.bf16.mxu0 %v1926_v2 }
  0x6a   :  { %1661 = vmatpush3.bf16.msra.mxu0 %v1742_v10  ;;  %v796_v10 = vunpack.c.0.s8 %v795_v7  ;;  %v1793_v7 = vld [vmem:[#allocation9 + $0x140] sm:$0xff]  }
  0x6b   :  { %1698 = vmatprep.subr.bf16.mxu0 %v1926_v2 }
  0x6d   :  { %1663 = vmatmul.mubr.bf16.vlgmr.msra.gmra.mrb[0].mxu0 %v1743_v11  ;;  %v798_v11 = vshrl.u32 %v797_v8, 7  ;;  %v1794_v8 = vld [vmem:[#allocation9 + $0x100] sm:$0xff]  }
  0x6e   :  { %1714 = vmatprep.mubr.msk.bf16.mxu0 %vm1927_vm0, %v1926_v2  ;;  %1699 = vmatpush3.bf16.msra.mxu0 %v1753_v36  ;;  %v1816_v36 = vld [vmem:[#allocation9 + $0x1a8] sm:$0xff]  }
  0x6f   :  { %1700 = vmatprep.subr.bf16.mxu0 %v1926_v2 }
  0x72   :  { %1701 = vmatpush3.bf16.msra.mxu0 %v1754_v37 }
  0x73   :  { %1702 = vmatprep.subr.bf16.mxu0 %v1926_v2 }
  0x76   :  { %1703 = vmatpush3.bf16.msra.mxu0 %v1755_v38  ;;  %v1819_v38 = vld [vmem:[#allocation9 + $0x1f0] sm:$0xff]  }
  0x77   :  { %1704 = vmatprep.subr.bf16.mxu0 %v1926_v2 }
  0x7a   :  { %1705 = vmatpush3.bf16.msra.mxu0 %v1756_v39  ;;  %v1820_v39 = vld [vmem:[#allocation9 + $0x1b0] sm:$0xff]  }
  0x7b   :  { %1706 = vmatprep.subr.bf16.mxu0 %v1926_v2 }
  0x7e   :  { %1707 = vmatpush3.bf16.msra.mxu0 %v1757_v40 }
  0x7f   :  { %1708 = vmatprep.subr.bf16.mxu0 %v1926_v2 }
  0x82   :  { %1709 = vmatpush3.bf16.msra.mxu0 %v1758_v41 }
  0x83   :  { %1710 = vmatprep.subr.bf16.mxu0 %v1926_v2 }
  0x86   :  { %1711 = vmatpush3.bf16.msra.mxu0 %v1759_v47 }
  0x87   :  { %1712 = vmatprep.subr.bf16.mxu0 %v1926_v2 }
  0x8a   :  { %1713 = vmatpush3.bf16.msra.mxu0 %v1760_v48  ;;  %v603_v48 = vld [vmem:[%s2197_s2 + $0x8] sm:$0xff] }
  0x8b   :  { %1580 = vmatprep.subr.bf16.mxu0 %v1763_v59  ;;  %v1766_v59 = vld [vmem:[#allocation9 + $0x8] sm:$0xff]  }
 0x140   :  { %v221_v12 = vpop.f32.mrb[0].mxu0 }
 0x141   :  { %v1664_v13 = vpop.f32.mrb[1].mxu0 }
 0x142   :  { %v224_v14 = vpop.f32.mrb[2].mxu0  ;;  %v799_v13 = vsub.s32 %v796_v10, %v798_v11  ;;  %v1798_v10 = vld [vmem:[#allocation9 + $0x108] sm:$0xff]   ;;  %v1801_v11 = vld [vmem:[#allocation9 + $0x150] sm:$0xff]  }
 0x143   :  { %v228_v15 = vpack.c.bf16 %v224_v14, %v221_v12  ;;  %v1665_v16 = vpop.f32.mrb[3].mxu0  ;;  %v1787_v12 = vld [vmem:[#allocation9 + $0xf0] sm:$0xff]  }
 0x144   :  { %v1788_v14 = vld [vmem:[#allocation9 + $0xb0] sm:$0xff]  }
 0x145   :  { %1667 = vmatpush3.bf16.msra.mxu1 %v228_v15  ;;  %v656_v15 = vld [vmem:[%s2198_s3] sm:$0xff] }
 0x146   :  { %1672 = vmatprep.subr.bf16.mxu1 %v1926_v2  ;;  %v800_v16 = vrot.slane %v656_v15, %v799_v13  ;;  %v793_v37 = vcombine.high %v656_v15, %v656_v15  ;;  %v1809_v15 = vld [vmem:[#allocation9 + $0x160] sm:$0xff]  }
 0x148   :  { %1669 = vmatmul.mubr.msk.bf16.vlgmr.msra.gmra.mrb[0].mxu1 %vm241_vm1, %v2117_v17  ;;  %v807_v40 = vrot.slane %v793_v37, %v799_v13 }
 0x149   :  { %1674 = vmatprep.mubr.msk.bf16.mxu1 %vm1927_vm0, %v1926_v2 }
 0x14a   :  { %v809_v41 = vcombine.high %v807_v40, %v807_v40 }
 0x21b   :  { %v279_v19 = vpop.f32.mrb[0].mxu1 }
 0x21c   :  { %v280_v20 = vadd.f32 %v1433_v18, %v279_v19  ;;  %v1670_v21 = vpop.f32.mrb[1].mxu1  ;;  %v808_v19 = vcombine.high %v800_v16, %v800_v16 }
 0x21d   :  { %v282_v22 = vpop.f32.mrb[2].mxu1 }
 0x21e   :  { %v283_v23 = vadd.f32 %v1433_v18, %v282_v22  ;;  %v1671_v24 = vpop.f32.mrb[3].mxu1  ;;  %v286_v25 = vmax.f32 %v280_v20, 0.0  ;;  %v1791_v18 = vld [vmem:[#allocation9 + $0xf8] sm:$0xff]   ;;  %v2155_v21 = vrot.slane %v808_v19, %v799_v13  ;;  %v2157_v22 = vrot.slane %v800_v16, %v799_v13  ;;  %v1810_v16 = vld [vmem:[#allocation9 + $0x120] sm:$0xff]   ;;  %v1814_v19 = vld [vmem:[#allocation9 + $0x128] sm:$0xff]  }
 0x21f   :  { %v1792_v20 = vld [vmem:[#allocation9 + $0xb8] sm:$0xff]   ;;  %v1795_v24 = vld [vmem:[#allocation9 + $0x1c0] sm:$0xff]  }
 0x220   :  { %v287_v26 = vmax.f32 %v283_v23, 0.0  ;;  %v840_v23 = vcombine.high %v2155_v21, %v2155_v21 }
 0x222   :  { %v288_v27 = vpack.c.bf16 %v287_v26, %v286_v25  ;;  %v838_v25 = vcombine.high %v2157_v22, %v2157_v22  ;;  %v1796_v26 = vld [vmem:[#allocation9 + $0x180] sm:$0xff]  }
 0x224   :  { %1673 = vmatpush3.bf16.msra.mxu1 %v288_v27  ;;  %v1799_v27 = vld [vmem:[#allocation9 + $0x1c8] sm:$0xff]  }
 0x225   :  { %1678 = vmatprep.subr.bf16.mxu1 %v1926_v2 }
 0x227   :  { %1675 = vmatmul.mubr.msk.bf16.vlgmr.msra.gmra.mrb[4].mxu1 %vm241_vm1, %v2117_v17 }
 0x228   :  { %1679 = vmatpush3.bf16.msra.mxu1 %v1745_v28  ;;  %1694 = vmatprep.mubr.msk.bf16.mxu1 %vm1927_vm0, %v1926_v2  ;;  %v1800_v28 = vld [vmem:[#allocation9 + $0x188] sm:$0xff]  }
 0x229   :  { %1680 = vmatprep.subr.bf16.mxu1 %v1926_v2 }
 0x22c   :  { %1681 = vmatpush3.bf16.msra.mxu1 %v1746_v29  ;;  %v1803_v29 = vld [vmem:[#allocation9 + $0x1d0] sm:$0xff]  }
 0x22d   :  { %1682 = vmatprep.subr.bf16.mxu1 %v1926_v2 }
 0x230   :  { %1683 = vmatpush3.bf16.msra.mxu1 %v1747_v30  ;;  %v1804_v30 = vld [vmem:[#allocation9 + $0x190] sm:$0xff]  }
 0x231   :  { %1684 = vmatprep.subr.bf16.mxu1 %v1926_v2 }
 0x234   :  { %1685 = vmatpush3.bf16.msra.mxu1 %v1748_v31  ;;  %v1807_v31 = vld [vmem:[#allocation9 + $0x1d8] sm:$0xff]  }
 0x235   :  { %1686 = vmatprep.subr.bf16.mxu1 %v1926_v2 }
 0x238   :  { %1687 = vmatpush3.bf16.msra.mxu1 %v1749_v32  ;;  %v1808_v32 = vld [vmem:[#allocation9 + $0x198] sm:$0xff]  }
 0x239   :  { %1688 = vmatprep.subr.bf16.mxu1 %v1926_v2 }
 0x23c   :  { %1689 = vmatpush3.bf16.msra.mxu1 %v1750_v33  ;;  %v1811_v33 = vld [vmem:[#allocation9 + $0x1e0] sm:$0xff]  }
 0x23d   :  { %1690 = vmatprep.subr.bf16.mxu1 %v1926_v2 }
 0x240   :  { %1691 = vmatpush3.bf16.msra.mxu1 %v1751_v34  ;;  %v1812_v34 = vld [vmem:[#allocation9 + $0x1a0] sm:$0xff]  }
 0x241   :  { %1692 = vmatprep.subr.bf16.mxu1 %v1926_v2 }
 0x244   :  { %1693 = vmatpush3.bf16.msra.mxu1 %v1752_v35  ;;  %v1815_v35 = vld [vmem:[#allocation9 + $0x1e8] sm:$0xff]  }
 0x245   :  { %1718 = vmatprep.subr.bf16.mxu1 %v1926_v2 }
 0x2fa   :  { %v323_v42 = vpop.f32.mrb[4].mxu1 }
 0x2fb   :  { %v1676_v43 = vpop.f32.mrb[5].mxu1 }
 0x2fc   :  { %v326_v44 = vpop.f32.mrb[6].mxu1  ;;  %v837_v43 = vrot.slane %v809_v41, %v799_v13 }
 0x2fd   :  { %v330_v45 = vpack.c.bf16 %v326_v44, %v323_v42  ;;  %v1677_v46 = vpop.f32.mrb[7].mxu1  ;;  %v1823_v42 = vld [vmem:[#allocation9 + $0x1f8] sm:$0xff]  }
 0x2fe   :  { %v1825_v44 = vld [vmem:[#allocation9 + $0x1b8] sm:$0xff]   ;;  %v841_v46 = vcombine.high %v837_v43, %v837_v43 }
 0x2ff   :  { %1695 = vmatmul.mubr.bf16.vlgmr.msra.gmra.mrb[8].mxu1 %v330_v45  ;;  %v2163_v45 = vrot.slane %v807_v40, %v799_v13  ;;  %v1805_v13 = vld [vmem:[#allocation9 + $0x158] sm:$0xff]  }
 0x300   :  { %1720 = vmatprep.mubr.msk.bf16.mxu1 %vm1927_vm0, %v1926_v2  ;;  %v1776_v2 = vld [vmem:[#allocation9 + $0x98] sm:$0xff]  }
 0x301   :  { %v839_v47 = vcombine.high %v2163_v45, %v2163_v45 }
 0x3d2   :  { %v436_v50 = vpop.f32.mrb[8].mxu1 }
 0x3d3   :  { %v437_v51 = vadd.f32 %v1437_v49, %v436_v50  ;;  %v1696_v52 = vpop.f32.mrb[9].mxu1  ;;  %v602_v50 = vld [vmem:[%s2197_s2] sm:$0xff] }
 0x3d4   :  { %v439_v53 = vpop.f32.mrb[10].mxu1 }
 0x3d5   :  { %v440_v54 = vadd.f32 %v1437_v49, %v439_v53  ;;  %v1697_v55 = vpop.f32.mrb[11].mxu1  ;;  %v443_v56 = vmax.f32 %v437_v51, 0.0  ;;  %v1929_v49 = vmov 0  }
 0x3d6   :  { %1734 = vset.pattern.permute.xlu0 %v1929_v49 }
 0x3d7   :  { %v444_v57 = vmax.f32 %v440_v54, 0.0  ;;  %611 = vperm.xlu0 %1734, %v603_v48   ;;  %v1761_v54 = vld [vmem:[#allocation9 + $0x40] sm:$0xff]  }
 0x3d9   :  { %v445_v58 = vpack.c.bf16 %v444_v57, %v443_v56  ;;  %v1762_v57 = vld [vmem:[#allocation9] sm:$0xff]  }
 0x3db   :  { %1715 = vmatmul.mubr.bf16.vlgmr.msra.gmra.mrb[4].mxu0 %v445_v58  ;;  %606 = vperm.xlu0 %1734, %v602_v50   ;;  %v1765_v58 = vld [vmem:[#allocation9 + $0x48] sm:$0xff]  }
 0x3dc   :  { %1581 = vmatpush3.bf16.msra.mxu0 %v1764_v60  ;;  %1306 = vmatprep.mubr.bf16.mxu0 %v840_v23  ;;  %v1769_v60 = vld [vmem:[#allocation9 + $0x50] sm:$0xff]   ;;  %v1822_v23 = vld [vmem:[#allocation9 + $0x138] sm:$0xff]  }
 0x3dd   :  { %1582 = vmatprep.subr.bf16.mxu0 %v1767_v61  ;;  %v1770_v61 = vld [vmem:[#allocation9 + $0x10] sm:$0xff]  }
 0x3e0   :  { %1583 = vmatpush3.bf16.msra.mxu0 %v1768_v62  ;;  %v1773_v62 = vld [vmem:[#allocation9 + $0x58] sm:$0xff]  }
 0x3e1   :  { %1584 = vmatprep.subr.bf16.mxu0 %v1771_v63  ;;  %v1774_v63 = vld [vmem:[#allocation9 + $0x18] sm:$0xff]  }
 0x3e4   :  { %1585 = vmatpush3.bf16.msra.mxu0 %v1772_v0  ;;  %v1777_v0 = vld [vmem:[#allocation9 + $0x60] sm:$0xff]  }
 0x3e5   :  { %1586 = vmatprep.subr.bf16.mxu0 %v1775_v1  ;;  %v1778_v1 = vld [vmem:[#allocation9 + $0x20] sm:$0xff]  }
 0x3e8   :  { %1587 = vmatpush3.bf16.msra.mxu0 %v1776_v2  ;;  %v1781_v2 = vld [vmem:[#allocation9 + $0x68] sm:$0xff]  }
 0x3e9   :  { %1588 = vmatprep.subr.bf16.mxu0 %v1779_v3  ;;  %v1785_v3 = vld [vmem:[#allocation9 + $0x70] sm:$0xff]  }
 0x3ec   :  { %1589 = vmatpush3.bf16.msra.mxu0 %v1780_v4  ;;  %v1786_v4 = vld [vmem:[#allocation9 + $0x30] sm:$0xff]  }
 0x3ed   :  { %1590 = vmatprep.subr.bf16.mxu0 %v1783_v5  ;;  %v1789_v5 = vld [vmem:[#allocation9 + $0x78] sm:$0xff]  }
 0x3f0   :  { %1591 = vmatpush3.bf16.msra.mxu0 %v1784_v9  ;;  %v1797_v9 = vld [vmem:[#allocation9 + $0x148] sm:$0xff]  }
 0x3f1   :  { %1592 = vmatprep.subr.bf16.mxu0 %v1787_v12  ;;  %v1802_v12 = vld [vmem:[#allocation9 + $0x110] sm:$0xff]  }
 0x3f4   :  { %1593 = vmatpush3.bf16.msra.mxu0 %v1788_v14  ;;  %v1806_v14 = vld [vmem:[#allocation9 + $0x118] sm:$0xff]  }
 0x3f5   :  { %1594 = vmatprep.subr.bf16.mxu0 %v1791_v18  ;;  %v1813_v18 = vld [vmem:[#allocation9 + $0x168] sm:$0xff]  }
 0x3f8   :  { %1595 = vmatpush3.bf16.msra.mxu0 %v1792_v20  ;;  %v1817_v20 = vld [vmem:[#allocation9 + $0x170] sm:$0xff]  }
 0x3f9   :  { %1624 = vmatprep.subr.bf16.mxu0 %v1795_v24 }
 0x3fb   :  { %1307 = vmatmul.mubr.bf16.vlgmr.msra.gmra.mrb[8].mxu0 %v838_v25 }
 0x3fc   :  { %1625 = vmatpush3.bf16.msra.mxu0 %v1796_v26  ;;  %1386 = vmatprep.mubr.bf16.mxu0 %v841_v46 }
 0x3fd   :  { %1626 = vmatprep.subr.bf16.mxu0 %v1799_v27 }
 0x400   :  { %1627 = vmatpush3.bf16.msra.mxu0 %v1800_v28 }
 0x401   :  { %1628 = vmatprep.subr.bf16.mxu0 %v1803_v29 }
 0x404   :  { %1629 = vmatpush3.bf16.msra.mxu0 %v1804_v30 }
 0x405   :  { %1630 = vmatprep.subr.bf16.mxu0 %v1807_v31 }
 0x408   :  { %1631 = vmatpush3.bf16.msra.mxu0 %v1808_v32 }
 0x409   :  { %1632 = vmatprep.subr.bf16.mxu0 %v1811_v33 }
 0x40c   :  { %1633 = vmatpush3.bf16.msra.mxu0 %v1812_v34 }
 0x40d   :  { %1634 = vmatprep.subr.bf16.mxu0 %v1815_v35  ;;  %v1454_v35 = vld [vmem:[%s2204_s9] ss:$0 sm:$0xff] }
 0x410   :  { %1635 = vmatpush3.bf16.msra.mxu0 %v1816_v36 }
 0x411   :  { %1636 = vmatprep.subr.bf16.mxu0 %v1819_v38 }
 0x414   :  { %1637 = vmatpush3.bf16.msra.mxu0 %v1820_v39 }
 0x415   :  { %1638 = vmatprep.subr.bf16.mxu0 %v1823_v42 }
 0x418   :  { %1639 = vmatpush3.bf16.msra.mxu0 %v1825_v44 }
 0x41b   :  { %1387 = vmatmul.mubr.bf16.vlgmr.msra.gmra.mrb[12].mxu0 %v839_v47 }
 0x456   :  { %v612_v34 = vpop.permute.xlu0 %611 }
 0x45a   :  { %v607_v40 = vpop.permute.xlu0 %606 }
 0x4ae   :  { %v544_v51 = vpop.f32.mrb[4].mxu0 }
 0x4af   :  { %v1716_v52 = vpop.f32.mrb[5].mxu0 }
 0x4b0   :  { %v547_v53 = vpop.f32.mrb[6].mxu0 }
 0x4b1   :  { %v551_v55 = vpack.c.bf16 %v547_v53, %v544_v51  ;;  %v1717_v56 = vpop.f32.mrb[7].mxu0 }
 0x4b3   :  { %1719 = vmatpush3.bf16.msra.mxu1 %v551_v55 }
 0x4b4   :  { %1558 = vmatprep.subr.bf16.mxu1 %v1761_v54 }
 0x4b6   :  { %1721 = vmatmul.mubr.msk.bf16.vlgmr.msra.gmra.mrb[12].mxu1 %vm241_vm1, %v2117_v17  ;;  %v1782_v17 = vld [vmem:[#allocation9 + $0x28] sm:$0xff]  }
 0x4b7   :  { %1559 = vmatpush3.bf16.msra.mxu1 %v1762_v57  ;;  %1266 = vmatprep.mubr.bf16.mxu1 %v2155_v21  ;;  %v1818_v21 = vld [vmem:[#allocation9 + $0x130] sm:$0xff]  }
 0x4b8   :  { %1560 = vmatprep.subr.bf16.mxu1 %v1765_v58 }
 0x4bb   :  { %1561 = vmatpush3.bf16.msra.mxu1 %v1766_v59  ;;  %v1456_v59 = vld [vmem:[%s2205_s10] ss:$0 sm:$0xff] }
 0x4bc   :  { %1562 = vmatprep.subr.bf16.mxu1 %v1769_v60 }
 0x4bf   :  { %1563 = vmatpush3.bf16.msra.mxu1 %v1770_v61 }
 0x4c0   :  { %1564 = vmatprep.subr.bf16.mxu1 %v1773_v62 }
 0x4c3   :  { %1565 = vmatpush3.bf16.msra.mxu1 %v1774_v63 }
 0x4c4   :  { %1566 = vmatprep.subr.bf16.mxu1 %v1777_v0 }
 0x4c7   :  { %1567 = vmatpush3.bf16.msra.mxu1 %v1778_v1 }
 0x4c8   :  { %1568 = vmatprep.subr.bf16.mxu1 %v1781_v2  ;;  %v1458_v2 = vld [vmem:[%s2208_s13] ss:$0 sm:$0xff] }
 0x4cb   :  { %1569 = vmatpush3.bf16.msra.mxu1 %v1782_v17 }
 0x4cc   :  { %1570 = vmatprep.subr.bf16.mxu1 %v1785_v3 }
 0x4ce   :  { %v1596_v24 = vpop.f32.mrb[8].mxu0 }
 0x4cf   :  { %1571 = vmatpush3.bf16.msra.mxu1 %v1786_v4  ;;  %v1597_v25 = vpop.f32.mrb[9].mxu0 }
 0x4d0   :  { %1572 = vmatprep.subr.bf16.mxu1 %v1789_v5  ;;  %v1599_v26 = vpop.f32.mrb[10].mxu0  ;;  %v1598_v28 = vadd.f32 %v1597_v25, %v1596_v24 }
 0x4d1   :  { %v1600_v27 = vpop.f32.mrb[11].mxu0 }
 0x4d3   :  { %1573 = vmatpush3.bf16.msra.mxu1 %v1790_v6 }
 0x4d4   :  { %1602 = vmatprep.subr.bf16.mxu1 %v1793_v7 }
 0x4d6   :  { %1267 = vmatmul.mubr.bf16.vlgmr.msra.gmra.mrb[16].mxu1 %v2157_v22  ;;  %v1821_v22 = vld [vmem:[#allocation9 + $0x178] sm:$0xff]  }
 0x4d7   :  { %1603 = vmatpush3.bf16.msra.mxu1 %v1794_v8  ;;  %1346 = vmatprep.mubr.bf16.mxu1 %v837_v43 }
 0x4d8   :  { %1604 = vmatprep.subr.bf16.mxu1 %v1797_v9 }
 0x4db   :  { %1605 = vmatpush3.bf16.msra.mxu1 %v1798_v10 }
 0x4dc   :  { %1606 = vmatprep.subr.bf16.mxu1 %v1801_v11 }
 0x4df   :  { %1607 = vmatpush3.bf16.msra.mxu1 %v1802_v12 }
 0x4e0   :  { %1608 = vmatprep.subr.bf16.mxu1 %v1805_v13 }
 0x4e3   :  { %1609 = vmatpush3.bf16.msra.mxu1 %v1806_v14 }
 0x4e4   :  { %1610 = vmatprep.subr.bf16.mxu1 %v1809_v15  ;;  %v1523_v15 = vld [vmem:[%s2209_s14] ss:$0 sm:$0xff] }
 0x4e7   :  { %1611 = vmatpush3.bf16.msra.mxu1 %v1810_v16 }
 0x4e8   :  { %1612 = vmatprep.subr.bf16.mxu1 %v1813_v18 }
 0x4eb   :  { %1613 = vmatpush3.bf16.msra.mxu1 %v1814_v19 }
 0x4ec   :  { %1614 = vmatprep.subr.bf16.mxu1 %v1817_v20  ;;  %v1457_v20 = vld [vmem:[#allocation2] ss:$0 sm:$0xff] }
 0x4ee   :  { %v1640_v29 = vpop.f32.mrb[12].mxu0 }
 0x4ef   :  { %1615 = vmatpush3.bf16.msra.mxu1 %v1818_v21  ;;  %v1641_v30 = vpop.f32.mrb[13].mxu0 }
 0x4f0   :  { %1616 = vmatprep.subr.bf16.mxu1 %v1821_v22  ;;  %v1643_v31 = vpop.f32.mrb[14].mxu0  ;;  %v1642_v32 = vadd.f32 %v1641_v30, %v1640_v29 }
 0x4f1   :  { %v1644_v33 = vpop.f32.mrb[15].mxu0 }
 0x4f3   :  { %1617 = vmatpush3.bf16.msra.mxu1 %v1822_v23  ;;  %v1524_v23 = vld [vmem:[#allocation3] ss:$0 sm:$0xff] }
 0x4f6   :  { %1347 = vmatmul.mubr.bf16.vlgmr.msra.gmra.mrb[20].mxu1 %v2163_v45 }
 0x589   :  { %v593_v36 = vpop.f32.mrb[12].mxu1 }
 0x58a   :  { %v594_v37 = vadd.f32 %v1454_v35, %v593_v36  ;;  %v1722_v38 = vpop.f32.mrb[13].mxu1 }
 0x58b   :  { %v596_v39 = vpop.f32.mrb[14].mxu1 }
 0x58c   :  { %v600_v41 = vmax.f32 %v594_v37, 0.0  ;;  %v597_v42 = vadd.f32 %v1454_v35, %v596_v39  ;;  %v1723_v43 = vpop.f32.mrb[15].mxu1 }
 0x58e   :  { %v601_v44 = vmax.f32 %v597_v42, 0.0  ;;  %v614_v45 = vadd.f32 %v607_v40, %v600_v41 }
 0x590   :  { %v615_v46 = vadd.f32 %v612_v34, %v601_v44  ;;  %v616_v47 = vrot.slane %v614_v45, 4 }
 0x592   :  { %v622_v48 = vrot.slane %v615_v46, 4  ;;  %v617_v49 = vmax.f32 %v614_v45, %v616_v47 }
 0x594   :  { %v623_v50 = vmax.f32 %v615_v46, %v622_v48  ;;  %v618_v51 = vrot.slane %v617_v49, 2 }
 0x596   :  { %v624_v52 = vrot.slane %v623_v50, 2  ;;  %v619_v53 = vmax.f32 %v617_v49, %v618_v51 }
 0x598   :  { %v625_v54 = vmax.f32 %v623_v50, %v624_v52  ;;  %v620_v55 = vrot.slane %v619_v53, 1 }
 0x59a   :  { %v626_v56 = vrot.slane %v625_v54, 1  ;;  %v621_v57 = vmax.f32 %v619_v53, %v620_v55 }
 0x59c   :  { %v627_v58 = vmax.f32 %v625_v54, %v626_v56  ;;  %v635_v61 = vmul.f32 %v1456_v59, %v621_v57 }
 0x59e   :  { %v636_v60 = vmul.f32 %v1456_v59, %v627_v58 }
 0x5a0   :  { %v639_v62 = vrot.slane %v636_v60, 7 }
 0x5a2   :  { %v641_v63 = vsel %vm640_vm2, %v639_v62, %v635_v61 }
 0x5a3   :  { %v644_v0 = vsel %vm643_vm3, %v641_v63, 0.0 }
 0x5a4   :  { %645 = vadd.xlane.f32.xlu1 %v644_v0 }
 0x5a9   :  { %v1574_v1 = vpop.f32.mrb[16].mxu1 }
 0x5aa   :  { %v1575_v17 = vpop.f32.mrb[17].mxu1 }
 0x5ab   :  { %v1576_v3 = vadd.f32 %v1575_v17, %v1574_v1  ;;  %v1577_v4 = vpop.f32.mrb[18].mxu1 }
 0x5ac   :  { %v1578_v5 = vpop.f32.mrb[19].mxu1 }
 0x5ad   :  { %v1269_v6 = vadd.f32 %v1576_v3, %v1458_v2 }
 0x5af   :  { %v1309_v7 = vadd.f32 %v1598_v28, %v1269_v6 }
 0x5c9   :  { %v1618_v8 = vpop.f32.mrb[20].mxu1 }
 0x5ca   :  { %v1619_v9 = vpop.f32.mrb[21].mxu1 }
 0x5cb   :  { %v1620_v10 = vadd.f32 %v1619_v9, %v1618_v8  ;;  %v1621_v11 = vpop.f32.mrb[22].mxu1 }
 0x5cc   :  { %v1622_v12 = vpop.f32.mrb[23].mxu1 }
 0x5cd   :  { %v1349_v13 = vadd.f32 %v1620_v10, %v1309_v7 }
 0x5cf   :  { %v1389_v14 = vadd.f32 %v1642_v32, %v1349_v13 }
 0x5d1   :  { %v1394_v16 = vmax.f32 %v1389_v14, 0.0 }
 0x5d3   :  { %v1402_v18 = vmul.f32 %v1523_v15, %v1394_v16 }
 0x5d5   :  { %v1403_v19 = vsel %vm643_vm3, %v1402_v18, 0.0 }
 0x5d6   :  { %1404 = vadd.xlane.f32.xlu1 %v1403_v19 }
 0x631   :  { %v646_v21 = vpop.xlane.xlu1 %645 }
 0x632   :  { %v654_v22 = vadd.f32 %v1457_v20, %v646_v21 }
 0x634   :  { %v655_v25 = vmax.f32 %v654_v22, 0.0 }
 0x663   :  { %v1405_v24 = vpop.xlane.xlu1 %1404 }
 0x664   :  { %v1413_v26 = vadd.f32 %v1524_v23, %v1405_v24 }
 0x666   :  { %v1414_v27 = vadd.f32 %v1413_v26, %v655_v25 }
 0x668   :  { %1416 = vst.msk [vmem:[%s2210_s16] sm:$0x3] %vm1415_vm4, %v1414_v27 }
 0x669   :  { %1421 = vsyncpa [#allocation5], 1 }
 0x66a   :  { %1422 = vsyncpa [#allocation7], 1 }
 0x66b   :  { %1423 = vsyncpa [#allocation10], 1 }

</bundles_post_ra>
